<compile_context>
chip_gen: v5e
topology: v5e:2x2
jax: 0.10.0
libtpu: 0.0.40
codegen_flags: <defaults>
</compile_context>

<pallas_src>
import jax
import jax.numpy as jnp
from jax.experimental import pallas as pl
from jax.experimental.pallas import tpu as pltpu


# ---------------------------------------------------------------------------
# Kernels
# ---------------------------------------------------------------------------

def _fft_l1_kron_kernel(pred_ref, target_ref, op_ref, out_ref):
    """Flattened 2-D DFT via one matmul. pred/target: (1, B, HW); op: (HW, 2HW)."""
    _, B, HW = pred_ref.shape
    d = (pred_ref[...] - target_ref[...]).reshape(B, HW).astype(op_ref.dtype)
    # p = d @ [Kre | Kim]  -> (B, 2*HW); K = HW keeps the MXU deep.
    p = jnp.dot(d, op_ref[...], preferred_element_type=jnp.float32)
    re = p[:, :HW]
    im = p[:, HW:]                      # true Im is -(this); |.| unaffected
    mag = jnp.sqrt(re * re + im * im)
    out_ref[...] = jnp.sum(mag, keepdims=True).reshape(1, 1, 1)


def _fft_l1_sep_kernel(pred_ref, target_ref, wst_ref, lst_ref, out_ref):
    """Separable 2-D DFT, two fused matmuls. pred/target: (1, B, H, W);
    wst: (W, 2W) = [C_W | S_W]; lst: (2H, H) = [C_H ; S_H]."""
    _, B, H, W = pred_ref.shape
    cdt = wst_ref.dtype
    d = (pred_ref[...] - target_ref[...]).reshape(B * H, W).astype(cdt)

    # Stage 1: right DFT for the whole batch in a single (B*H, W) @ (W, 2W).
    r = jnp.dot(d, wst_ref[...], preferred_element_type=jnp.float32)   # (B*H, 2W)

    # Fold the batch into the lane dim so stage 2 is ONE matmul with a shared lhs
    # (no broadcast of the DFT matrix, no batched einsum).
    r_cat = jnp.transpose(r.reshape(B, H, 2 * W), (1, 0, 2)).reshape(H, B * 2 * W)
    p = jnp.dot(lst_ref[...], r_cat.astype(cdt),
                preferred_element_type=jnp.float32)                    # (2H, B*2W)

    t = p[:H].reshape(H, B, 2, W)       # [C_H d C_W | C_H d S_W]
    s = p[H:].reshape(H, B, 2, W)       # [S_H d C_W | S_H d S_W]
    re = t[:, :, 0, :] - s[:, :, 1, :]
    im = t[:, :, 1, :] + s[:, :, 0, :]  # true Im is -(this); |.| unaffected
    mag = jnp.sqrt(re * re + im * im)
    out_ref[...] = jnp.sum(mag, keepdims=True).reshape(1, 1, 1)


# ---------------------------------------------------------------------------
# Helpers
# ---------------------------------------------------------------------------

def _dft_mats(n):
    k = jnp.arange(n, dtype=jnp.float32)
    theta = (2.0 * jnp.pi / n) * jnp.outer(k, k)
    return jnp.cos(theta), jnp.sin(theta)          # F = C - i*S


def _vmem_capacity_bytes():
    """Per-core VMEM capacity; conservative fallback (v7x floor) if unknown."""
    try:
        info = pltpu.get_tpu_info()
        cap = getattr(info, "vmem_capacity_bytes", None)
        if cap:
            return int(cap)
    except Exception:
        pass
    return 64 << 20


def _rup(x, m):
    return ((x + m - 1) // m) * m


def _pick_batch_kron(nc, hw, in_itemsize, cd_itemsize, budget):
    """Images per grid step for the Kronecker path."""
    hw_pad = _rup(hw, 128)
    hw2_pad = _rup(2 * hw, 128)
    # Per-image resident bytes (lane-padded): 2 inputs x 2 pipeline buffers,
    # d (compute dtype), p (f32), re/im/mag (f32).
    per_image = (2 * 2 * hw_pad * in_itemsize
                 + hw_pad * cd_itemsize
                 + hw2_pad * 4
                 + 3 * hw_pad * 4)
    op_bytes = 2 * hw * 2 * hw * cd_itemsize       # operator, x2 buffers
    avail = max(budget - op_bytes, per_image)
    b = max(1, avail // per_image)
    b = min(b, 2048)                                # plenty of M-rows / overhead amortized
    if nc >= 2:
        b = min(b, -(-nc // 2))                     # keep G >= 2 (v7x: 2 TensorCores)
    return int(max(1, min(b, nc)))


def _pick_batch_sep(nc, h, w, in_itemsize, cd_itemsize, budget):
    """Images per grid step for the separable path (large images)."""
    w_pad = _rup(w, 128)
    w2_pad = _rup(2 * w, 128)
    per_image = (2 * 2 * h * w_pad * in_itemsize    # 2 inputs x 2 buffers
                 + h * w_pad * cd_itemsize          # d
                 + h * w2_pad * 4                   # r (f32)
                 + h * w2_pad * cd_itemsize         # r_cat (transposed copy)
                 + 2 * h * w2_pad * 4               # p
                 + 3 * h * w_pad * 4)               # re/im/mag
    op_bytes = 2 * (2 * h * h + 2 * w * w) * cd_itemsize
    avail = max(budget - op_bytes, per_image)
    b = max(1, avail // per_image)
    b = min(b, max(1, 2048 // h))                   # ~1-2k stage-1 rows
    if nc >= 2:
        b = min(b, -(-nc // 2))                     # keep G >= 2
    return int(max(1, min(b, nc)))


# ---------------------------------------------------------------------------
# Public entry point
# ---------------------------------------------------------------------------

def fft_loss(pred, target, loss_weight=1.0, reduction="mean", weight=None):
    """pred, target: (N, C, H, W) real arrays (NCHW, like PyTorch)."""
    if reduction not in ("none", "mean", "sum"):
        raise ValueError(f"Unsupported reduction mode: {reduction}")
    if weight is not None:
        # TODO(synk): element-wise weight tensor is not implemented in this kernel.
        raise NotImplementedError("weight is not supported")
    if reduction == "none":
        # TODO(synk): reduction='none' (full (N,C,H,W) magnitude map) not implemented.
        raise NotImplementedError("reduction='none' not implemented")
    assert pred.shape == target.shape
    N, C, H, W = pred.shape
    nc = N * C
    hw = H * W

    # bf16 inputs feed the MXU in bf16 (v6e/v7x native, f32 accumulation);
    # everything else computes in f32.
    compute_dtype = jnp.bfloat16 if pred.dtype == jnp.bfloat16 else jnp.float32
    cd_itemsize = jnp.dtype(compute_dtype).itemsize
    in_itemsize = pred.dtype.itemsize

    cap = _vmem_capacity_bytes()
    budget = int(cap * 0.55)                        # tile budget, leave compiler headroom
    vmem_limit = max(32 << 20, min(int(cap * 0.85), 112 << 20))

    use_kron = hw <= 1024                           # operator stays small in VMEM

    if use_kron:
        B = _pick_batch_kron(nc, hw, in_itemsize, cd_itemsize, budget)
        G = int(pl.cdiv(nc, B))
        nc_pad = G * B

        p2 = pred.reshape(nc, hw)
        t2 = target.reshape(nc, hw)
        if nc_pad != nc:
            padn = nc_pad - nc
            p2 = jnp.pad(p2, ((0, padn), (0, 0)))   # zero diff -> zero contribution
            t2 = jnp.pad(t2, ((0, padn), (0, 0)))
        p3 = p2.reshape(G, B, hw)
        t3 = t2.reshape(G, B, hw)

        ch, sh = _dft_mats(H)
        cw, sw = _dft_mats(W)
        kre = jnp.kron(ch, cw) - jnp.kron(sh, sw)
        kim = jnp.kron(ch, sw) + jnp.kron(sh, cw)   # Im = -(this); sign irrelevant for |.|
        op = jnp.concatenate([kre, kim], axis=1).astype(compute_dtype)   # (HW, 2HW)

        ce = pl.CostEstimate(
            flops=int(nc_pad * 2 * hw * 2 * hw + 8 * nc_pad * hw),
            transcendentals=int(nc_pad * hw),
            bytes_accessed=int(2 * nc_pad * hw * in_itemsize
                               + 2 * hw * 2 * hw * cd_itemsize + G * 4),
        )

        partials = pl.pallas_call(
            _fft_l1_kron_kernel,
            out_shape=jax.ShapeDtypeStruct((G, 1, 1), jnp.float32),
            grid_spec=pltpu.PrefetchScalarGridSpec(
                num_scalar_prefetch=0,
                grid=(G,),
                in_specs=[
                    pl.BlockSpec((1, B, hw), lambda i: (i, 0, 0)),
                    pl.BlockSpec((1, B, hw), lambda i: (i, 0, 0)),
                    pl.BlockSpec((hw, 2 * hw), lambda i: (0, 0)),
                ],
                out_specs=pl.BlockSpec((1, 1, 1), lambda i: (i, 0, 0)),
            ),
            compiler_params=pltpu.CompilerParams(
                dimension_semantics=("parallel",),
                vmem_limit_bytes=vmem_limit,
            ),
            cost_estimate=ce,
        )(p3, t3, op)
    else:
        B = _pick_batch_sep(nc, H, W, in_itemsize, cd_itemsize, budget)
        G = int(pl.cdiv(nc, B))
        nc_pad = G * B

        p3 = pred.reshape(nc, H, W)
        t3 = target.reshape(nc, H, W)
        if nc_pad != nc:
            padn = nc_pad - nc
            p3 = jnp.pad(p3, ((0, padn), (0, 0), (0, 0)))
            t3 = jnp.pad(t3, ((0, padn), (0, 0), (0, 0)))
        p4 = p3.reshape(G, B, H, W)
        t4 = t3.reshape(G, B, H, W)

        ch, sh = _dft_mats(H)
        cw, sw = _dft_mats(W)
        lst = jnp.concatenate([ch, sh], axis=0).astype(compute_dtype)    # (2H, H)
        wst = jnp.concatenate([cw, sw], axis=1).astype(compute_dtype)    # (W, 2W)

        ce = pl.CostEstimate(
            flops=int(nc_pad * (4 * H * W * W + 8 * H * H * W) + 8 * nc_pad * hw),
            transcendentals=int(nc_pad * hw),
            bytes_accessed=int(2 * nc_pad * hw * in_itemsize
                               + 2 * (2 * H * H + 2 * W * W) * cd_itemsize + G * 4),
        )

        partials = pl.pallas_call(
            _fft_l1_sep_kernel,
            out_shape=jax.ShapeDtypeStruct((G, 1, 1), jnp.float32),
            grid_spec=pltpu.PrefetchScalarGridSpec(
                num_scalar_prefetch=0,
                grid=(G,),
                in_specs=[
                    pl.BlockSpec((1, B, H, W), lambda i: (i, 0, 0, 0)),
                    pl.BlockSpec((1, B, H, W), lambda i: (i, 0, 0, 0)),
                    pl.BlockSpec((W, 2 * W), lambda i: (0, 0)),
                    pl.BlockSpec((2 * H, H), lambda i: (0, 0)),
                ],
                out_specs=pl.BlockSpec((1, 1, 1), lambda i: (i, 0, 0)),
            ),
            compiler_params=pltpu.CompilerParams(
                dimension_semantics=("parallel",),
                vmem_limit_bytes=vmem_limit,
            ),
            cost_estimate=ce,
        )(p4, t4, wst, lst)

    total = jnp.sum(partials)
    if reduction == "mean":
        red = total / (N * C * H * W)
    else:  # "sum"
        red = total
    return loss_weight * red


# ---------------------------------------------------------------------------
# Reference & test
# ---------------------------------------------------------------------------

def _reference(pred, target, loss_weight=1.0):
    pf = jnp.fft.fftn(pred, axes=(2, 3))
    tf = jnp.fft.fftn(target, axes=(2, 3))
    return loss_weight * jnp.mean(jnp.abs(pf - tf))


if __name__ == "__main__":
    key = jax.random.PRNGKey(0)
    k1, k2, k3, k4 = jax.random.split(key, 4)

    # Primary small test (matches the module's expected NCHW layout).
    N, C, H, W = 2, 4, 16, 16
    pred = jax.random.normal(k1, (N, C, H, W), dtype=jnp.float32)
    target = jax.random.normal(k2, (N, C, H, W), dtype=jnp.float32)

    out = jax.block_until_ready(fft_loss(pred, target, 1.0, "mean"))
    ref = jax.block_until_ready(_reference(pred, target, 1.0))
    assert jnp.allclose(out, ref, rtol=1e-3, atol=1e-3), (out, ref)

    # Second check: non-square H/W, N*C split over two grid steps
    # (exercises the multi-block "parallel" grid path).
    N2, C2, H2, W2 = 5, 4, 16, 32
    pred2 = jax.random.normal(k3, (N2, C2, H2, W2), dtype=jnp.float32)
    target2 = jax.random.normal(k4, (N2, C2, H2, W2), dtype=jnp.float32)

    out2 = jax.block_until_ready(fft_loss(pred2, target2, 0.5, "mean"))
    ref2 = jax.block_until_ready(_reference(pred2, target2, 0.5))
    assert jnp.allclose(out2, ref2, rtol=1e-3, atol=1e-3), (out2, ref2)

    print("KERNEL_OK")
</pallas_src>

<mosaic_0001>
module attributes {stable_mosaic.version = 11 : i64} {
  func.func @_fft_l1_kron_kernel(%arg0: i32, %arg1: memref<1x4x256xf32, #tpu.memory_space<vmem>>, %arg2: memref<1x4x256xf32, #tpu.memory_space<vmem>>, %arg3: memref<256x512xf32, #tpu.memory_space<vmem>>, %arg4: memref<1x1x1xf32, #tpu.memory_space<vmem>>) attributes {dimension_semantics = [#tpu.dimension_semantics<parallel>], iteration_bounds = array<i64: 2>, scalar_prefetch = 0 : i64, scratch_operands = 0 : i64, tpu.core_type = #tpu.core_type<tc>, window_params = [{transform_indices = @transform_0, window_bounds = array<i64: 1, 4, 256>}, {transform_indices = @transform_1, window_bounds = array<i64: 1, 4, 256>}, {pipeline_mode = #tpu.pipeline_mode<synchronous>, transform_indices = @transform_2, window_bounds = array<i64: 256, 512>}, {transform_indices = @transform_3, window_bounds = array<i64: 1, 1, 1>}]} {
    %c0 = arith.constant 0 : index
    %c0_0 = arith.constant 0 : index
    %c0_1 = arith.constant 0 : index
    %0 = vector.load %arg1[%c0, %c0_0, %c0_1] : memref<1x4x256xf32, #tpu.memory_space<vmem>>, vector<1x4x256xf32>
    %c0_2 = arith.constant 0 : index
    %c0_3 = arith.constant 0 : index
    %c0_4 = arith.constant 0 : index
    %1 = vector.load %arg2[%c0_2, %c0_3, %c0_4] : memref<1x4x256xf32, #tpu.memory_space<vmem>>, vector<1x4x256xf32>
    %2 = arith.subf %0, %1 : vector<1x4x256xf32>
    %3 = vector.shape_cast %2 : vector<1x4x256xf32> to vector<4x256xf32>
    %c0_5 = arith.constant 0 : index
    %c0_6 = arith.constant 0 : index
    %4 = vector.load %arg3[%c0_5, %c0_6] : memref<256x512xf32, #tpu.memory_space<vmem>>, vector<256x512xf32>
    %cst = arith.constant dense<0.000000e+00> : vector<4x512xf32>
    %5 = tpu.matmul %3, %4, %cst {dimension_numbers = #tpu.dot_dimension_numbers<[1], [0], [0], [1], [0, 0, 1, 1], [], []>} : vector<4x256xf32>, vector<256x512xf32>, vector<4x512xf32> -> vector<4x512xf32>
    %6 = vector.extract_strided_slice %5 {offsets = [0, 0], sizes = [4, 256], strides = [1, 1]} : vector<4x512xf32> to vector<4x256xf32>
    %7 = vector.extract_strided_slice %5 {offsets = [0, 256], sizes = [4, 256], strides = [1, 1]} : vector<4x512xf32> to vector<4x256xf32>
    %8 = arith.mulf %6, %6 : vector<4x256xf32>
    %9 = arith.mulf %7, %7 : vector<4x256xf32>
    %10 = arith.addf %8, %9 : vector<4x256xf32>
    %11 = math.sqrt %10 : vector<4x256xf32>
    %12 = vector.shape_cast %11 : vector<4x256xf32> to vector<1x4x256xf32>
    %cst_7 = arith.constant dense<0.000000e+00> : vector<1xf32>
    %13 = vector.multi_reduction <add>, %12, %cst_7 [1, 2] : vector<1x4x256xf32> to vector<1xf32>
    %14 = vector.shape_cast %13 : vector<1xf32> to vector<1x1x1xf32>
    %15 = vector.extract %14[0, 0, 0] : f32 from vector<1x1x1xf32>
    %16 = vector.broadcast %15 : f32 to vector<1x1xf32>
    %17 = vector.shape_cast %16 : vector<1x1xf32> to vector<1x1x1xf32>
    %c0_8 = arith.constant 0 : index
    %c0_9 = arith.constant 0 : index
    %c0_10 = arith.constant 0 : index
    %18 = vector.load %arg4[%c0_8, %c0_9, %c0_10] : memref<1x1x1xf32, #tpu.memory_space<vmem>>, vector<1x1x1xf32>
    tpu.vector_store %arg4[%c0_8, %c0_9, %c0_10], %17 {strides = array<i32>} : memref<1x1x1xf32, #tpu.memory_space<vmem>>, vector<1x1x1xf32>,
    return
  }
  func.func @transform_0(%arg0: i32) -> (i32, i32, i32) {
    %c0_i32 = arith.constant 0 : i32
    %c0_i32_0 = arith.constant 0 : i32
    %c0_i32_1 = arith.constant 0 : i32
    return %arg0, %c0_i32, %c0_i32_0 : i32, i32, i32
  }
  func.func @transform_1(%arg0: i32) -> (i32, i32, i32) {
    %c0_i32 = arith.constant 0 : i32
    %c0_i32_0 = arith.constant 0 : i32
    %c0_i32_1 = arith.constant 0 : i32
    return %arg0, %c0_i32, %c0_i32_0 : i32, i32, i32
  }
  func.func @transform_2(%arg0: i32) -> (i32, i32) {
    %c0_i32 = arith.constant 0 : i32
    %c0_i32_0 = arith.constant 0 : i32
    %c0_i32_1 = arith.constant 0 : i32
    return %c0_i32, %c0_i32_0 : i32, i32
  }
  func.func @transform_3(%arg0: i32) -> (i32, i32, i32) {
    %c0_i32 = arith.constant 0 : i32
    %c0_i32_0 = arith.constant 0 : i32
    %c0_i32_1 = arith.constant 0 : i32
    return %arg0, %c0_i32, %c0_i32_0 : i32, i32, i32
  }
}

</mosaic_0001>

<bundles_post_ra>
// kernel: tpu_custom_call.1
= control target key start
LH: loop header
LB: loop body
LE: loop exit
PB: predicated region body
PF: predicated region fallthrough
CT: control target
= control target key end

     0   :  { %8 = vsyncpa [#allocation3], 0  ;;  %s1053_s0 = inlined_call_operand.hbm [shape: f32[2,4,256], index: 0, kind: input, shape index: {}]   ;;  %s1054_s1 = inlined_call_operand.hbm [shape: f32[2,4,256], index: 1, kind: input, shape index: {}]   ;;  %s1055_s2 = inlined_call_operand.hbm [shape: f32[256,512], index: 2, kind: input, shape index: {}]   ;;  %s1056_s3 = inlined_call_operand.vmem [shape: f32[2,1,1], index: 3, kind: output, shape index: {}]  }
   0x1   :  { %10 = vsyncpa [#allocation3 + $0x1], 0 }
   0x2   :  { %11 = vsyncpa [#allocation5], 0 }
   0x3   :  { %13 = vsyncpa [#allocation5 + $0x1], 0  ;;  %s915_s12 = smov 0   ;;  %s917_s13 = smov 0  }
   0x4   :  { %s919_s14 = smov 0   ;;  %s921_s15 = smov 0  }
   0x5 LB: > { %s134_s18 = sshll.u32 %s1055_s2, 4  ;;  %s937_s19 = sadd.s32 4294967295, %s890_s15   ;;  %s890_s15 = sphi %s921_s15, %s1063_s15   ;;  %s886_s14 = sphi %s919_s14, %s1062_s14   ;;  %s882_s13 = sphi %s917_s13, %s1061_s13   ;;  %s878_s12 = sphi %s915_s12, %s1060_s12   ;;  %s135_s18 = int_to_ptr.hbm [resolvable:$true] %s134_s18 }
   0x6   : > { %p678_p0 = scmp.ge.s32.totalorder %s890_s15, 1  ;;  %p40_p1 = scmp.eq.s32.totalorder %s937_s19, 0 }
   0x7   : > { %p123_p2 = scmp.lt.s32.totalorder %s890_s15, 3  ;;  %s892_s21 = smov [#allocation6]  }
   0x8   : > { %s136_s22 = sshll.u32 %s892_s21, 4  ;;  %s893_s23 = smov 512   ;;  %s137_s22 = int_to_ptr.vmem [resolvable:$true] %s136_s22 }
   0x9   : > { %p942_p3 = pnand %p678_p0, %p123_p2  ;;  %s894_s24 = smov 32  }
   0xa   : > { %s951_s25 = sadd.s32 1, %s890_s15   ;;  %s26_s27 = sadd.s32 1, %s886_s14 }
   0xb   : > { %p705_p4 = pneg %p942_p3  ;;  %s23_s26 = ssub.s32 %s890_s15, %s951_s25 }
   0xc   : > { %p24_p6 = scmp.eq.s32.totalorder %s23_s26, 0  ;;  %p33_p7 = scmp.ne.s32.totalorder %s886_s14, %s882_s13 }
   0xd   : > { %p706_p5 = pnand %p705_p4, %p40_p1  ;;  %p34_p8 = scmp.eq.s32.totalorder %s890_s15, 0 }
   0xe   : > { %p39_p9 = scmp.ne.s32.totalorder %s882_s13, %s878_s12  ;;  %p717_p12 = scmp.lt.s32.totalorder %s890_s15, 2 }
   0xf   : > { %708 = dma.hbm_to_vmem [thread:$0]  (!%p706_p5), %s135_s18, 16384, %s137_s22, [#allocation5], %s893_s23, %s893_s23, %s894_s24  }
  0x10   : > { %s961_s28 = scalar_select %p24_p6, %s886_s14, %s26_s27  }
  0x11   : > { %p35_p10 = por %p34_p8, %p33_p7  ;;  %p965_p11 = por %p40_p1, %p39_p9 }
  0x12   : > { %s150_s30 = sand.u32 1, %s886_s14   ;;  %s693_s5 = sshll.u32 %s890_s15, 3 }
  0x13   : > { %s971_s4 = sshll.u32 %s150_s30, 3  ;;  %s159_s8 = scalar_lea.hbm %s1053_s0, %s693_s5 }
  0x14   : > { %s154_s9 = scalar_lea.vmem [#allocation2], %s971_s4  ;;  %s161_s11 = sshll.u32 %s159_s8, 4  ;;  %s162_s11 = int_to_ptr.hbm [resolvable:$true] %s161_s11 }
  0x15   : > { %s163_s10 = sshll.u32 %s154_s9, 4  ;;  %p978_p13 = pnand %p717_p12, %p35_p10  ;;  %s164_s10 = int_to_ptr.vmem [resolvable:$true] %s163_s10 }
  0x16   : > { %s179_s18 = scalar_lea.hbm %s1054_s1, %s693_s5  ;;  %s170_s21 = sand.u32 1, %s890_s15  }
  0x17   : > { %s151_s22 = scalar_lea.sflag [#allocation3], %s150_s30  ;;  %s788_s23 = sshra.s32 %s162_s11, 4  ;;  %s789_s23 = int_to_ptr.hbm [resolvable:$true] %s788_s23 }
  0x18   : > { %s790_s24 = scalar_lea.hbm %s789_s23, 8  ;;  %p792_p2 = pneg %p978_p13 }
  0x19   : > { %p791_p0 = scmp.ne.s32.totalorder %s789_s23, %s790_s24  ;;  %s795_s6 = scalar_lea.hbm %s1053_s0, 16 }
  0x1a   : > { %p796_p6 = scmp.lt.s32.totalorder %s789_s23, %s1053_s0  ;;  %p797_p7 = scmp.lt.s32.totalorder %s795_s6, %s790_s24 }
  0x1b   : > { %p793_p4 = pnand %p792_p2, %p791_p0 }
  0x1c   : > { %p798_p8 = por %p797_p7, %p796_p6 }
  0x1d   : > { %p794_p5 = pneg %p793_p4 }
  0x1f   : > { %p799_p9 = pnand %p798_p8, %p794_p5 }
  0x21   : > { %802 = shalt.err (!%p799_p9)
}
  0x22   : > { %712 = dma.hbm_to_vmem [thread:$0]  (!%p978_p13), %s162_s11, 128, %s164_s10, %s151_s22  }
  0x23   : > { %s181_s15 = sshll.u32 %s179_s18, 4  ;;  %s174_s30 = scalar_lea.vmem [#allocation4], %s971_s4  ;;  %s182_s15 = int_to_ptr.hbm [resolvable:$true] %s181_s15 }
  0x24   : > { %s183_s5 = sshll.u32 %s174_s30, 4  ;;  %s171_s9 = scalar_lea.sflag [#allocation5], %s170_s21  ;;  %s184_s5 = int_to_ptr.vmem [resolvable:$true] %s183_s5 }
  0x25   : > { %s818_s16 = sshra.s32 %s182_s15, 4  ;;  %s825_s26 = scalar_lea.hbm %s1054_s1, 16  ;;  %s819_s16 = int_to_ptr.hbm [resolvable:$true] %s818_s16 }
  0x26   : > { %s820_s17 = scalar_lea.hbm %s819_s16, 8  ;;  %p826_p4 = scmp.lt.s32.totalorder %s819_s16, %s1054_s1 }
  0x27   : > { %p821_p10 = scmp.ne.s32.totalorder %s819_s16, %s820_s17  ;;  %p827_p5 = scmp.lt.s32.totalorder %s825_s26, %s820_s17 }
  0x29   : > { %p823_p12 = pnand %p821_p10, %p792_p2  ;;  %p828_p6 = por %p827_p5, %p826_p4 }
  0x2b   : > { %p824_p0 = pneg %p823_p12 }
  0x2d   : > { %p829_p7 = pnand %p828_p6, %p824_p0 }
  0x2f   : > { %832 = shalt.err (!%p829_p7)
}
  0x30   : > { %715 = dma.hbm_to_vmem [thread:$0]  (!%p978_p13), %s182_s15, 128, %s184_s5, %s171_s9  }
  0x31   : > { %192 = sbr.rel (%p942_p3) target bundleno = 470 (0x1d6), region = 32  ;;  %s194_s4 = sand.u32 (!%p942_p3), 1, %s882_s13  }
  0x32   : > { %s1014_s11 = sshll.u32 (!%p942_p3), %s194_s4, 3  ;;  %s195_s18 = scalar_lea.sflag (!%p942_p3), [#allocation3], %s194_s4 }
  0x33   : > { %s198_s21 = scalar_lea.vmem (!%p942_p3), [#allocation2], %s1014_s11 }
  0x36   : > { %865 = dma.done.wait (%p965_p11), %s195_s18, 128  }
  0x37   : > { %867 = vsyncadd (%p965_p11), %s195_s18, 4294967168  ;;  %s204_s12 = sand.u32 1, %s937_s19   ;;  %s208_s20 = scalar_lea.vmem [#allocation4], %s1014_s11 }
  0x38   : > { %s205_s22 = scalar_lea.sflag [#allocation5], %s204_s12 }
  0x39   : > { %869 = dma.done.wait (%p965_p11), %s205_s22, 128  }
  0x3a   : > { %871 = vsyncadd (%p965_p11), %s205_s22, 4294967168 }
  0x3b   : > { %873 = dma.done.wait (%p40_p1), [#allocation5], 16384  }
  0x3c   : > { %875 = vsyncadd (%p40_p1), [#allocation5], 4294950912  ;;  %v306_v0 = vld [vmem:[#allocation6 + $0x1e0] sm:$0xff]  ;;  %v307_v2 = vld [vmem:[#allocation6 + $0x1e8] sm:$0xff]  ;;  %vm570_vm3 = vcmask 1043456   ;;  %p240_p1 = scmp.lt.s32.totalorder %s937_s19, 1 }
  0x3d   : > { %v370_v1 = vld [vmem:[#allocation6 + $0x3e0] sm:$0xff]  ;;  %380 = vmatpush.msra.mxu0 %v306_v0  ;;  %v371_v3 = vld [vmem:[#allocation6 + $0x3e8] sm:$0xff]  ;;  %420 = vmatpush.msra.mxu2 %v307_v2  ;;  %v308_v0 = vld [vmem:[#allocation6 + $0x1f0] sm:$0xff]  ;;  %vm584_vm5 = vcmask 0  }
  0x3e   : > { %400 = vmatpush.msra.mxu1 %v370_v1  ;;  %v302_v4 = vld [vmem:[#allocation6 + $0x1c0] sm:$0xff]  ;;  %440 = vmatpush.msra.mxu3 %v371_v3  ;;  %v303_v6 = vld [vmem:[#allocation6 + $0x1c8] sm:$0xff]  ;;  %v372_v1 = vld [vmem:[#allocation6 + $0x3f0] sm:$0xff]  ;;  %s1065_s19 = smov (!%p240_p1, %s937_s19), 1 }
  0x3f   : > { %v366_v5 = vld [vmem:[#allocation6 + $0x3c0] sm:$0xff]  ;;  %v367_v7 = vld [vmem:[#allocation6 + $0x3c8] sm:$0xff]  ;;  %381 = vmatpush.msra.mxu0 %v302_v4  ;;  %421 = vmatpush.msra.mxu2 %v303_v6  ;;  %v309_v2 = vld [vmem:[#allocation6 + $0x1f8] sm:$0xff]  ;;  %s242_s7 = scalar_lea.vmem %s1056_s3, %s1065_s19 }
  0x40   : > { %v298_v8 = vld [vmem:[#allocation6 + $0x1a0] sm:$0xff]  ;;  %401 = vmatpush.msra.mxu1 %v366_v5  ;;  %v299_v10 = vld [vmem:[#allocation6 + $0x1a8] sm:$0xff]  ;;  %441 = vmatpush.msra.mxu3 %v367_v7  ;;  %v373_v3 = vld [vmem:[#allocation6 + $0x3f8] sm:$0xff] }
  0x41   : > { %v362_v9 = vld [vmem:[#allocation6 + $0x3a0] sm:$0xff]  ;;  %v363_v11 = vld [vmem:[#allocation6 + $0x3a8] sm:$0xff]  ;;  %382 = vmatpush.msra.mxu0 %v298_v8  ;;  %422 = vmatpush.msra.mxu2 %v299_v10  ;;  %v304_v4 = vld [vmem:[#allocation6 + $0x1d0] sm:$0xff] }
  0x42   : > { %v294_v12 = vld [vmem:[#allocation6 + $0x180] sm:$0xff]  ;;  %402 = vmatpush.msra.mxu1 %v362_v9  ;;  %v295_v14 = vld [vmem:[#allocation6 + $0x188] sm:$0xff]  ;;  %442 = vmatpush.msra.mxu3 %v363_v11  ;;  %v368_v5 = vld [vmem:[#allocation6 + $0x3d0] sm:$0xff] }
  0x43   : > { %v358_v13 = vld [vmem:[#allocation6 + $0x380] sm:$0xff]  ;;  %v359_v15 = vld [vmem:[#allocation6 + $0x388] sm:$0xff]  ;;  %383 = vmatpush.msra.mxu0 %v294_v12  ;;  %423 = vmatpush.msra.mxu2 %v295_v14  ;;  %v305_v6 = vld [vmem:[#allocation6 + $0x1d8] sm:$0xff] }
  0x44   : > { %v290_v16 = vld [vmem:[#allocation6 + $0x160] sm:$0xff]  ;;  %403 = vmatpush.msra.mxu1 %v358_v13  ;;  %v291_v18 = vld [vmem:[#allocation6 + $0x168] sm:$0xff]  ;;  %443 = vmatpush.msra.mxu3 %v359_v15  ;;  %v369_v7 = vld [vmem:[#allocation6 + $0x3d8] sm:$0xff] }
  0x45   : > { %v354_v17 = vld [vmem:[#allocation6 + $0x360] sm:$0xff]  ;;  %v355_v19 = vld [vmem:[#allocation6 + $0x368] sm:$0xff]  ;;  %384 = vmatpush.msra.mxu0 %v290_v16  ;;  %424 = vmatpush.msra.mxu2 %v291_v18  ;;  %v300_v8 = vld [vmem:[#allocation6 + $0x1b0] sm:$0xff] }
  0x46   : > { %v286_v20 = vld [vmem:[#allocation6 + $0x140] sm:$0xff]  ;;  %404 = vmatpush.msra.mxu1 %v354_v17  ;;  %v287_v22 = vld [vmem:[#allocation6 + $0x148] sm:$0xff]  ;;  %444 = vmatpush.msra.mxu3 %v355_v19  ;;  %v364_v9 = vld [vmem:[#allocation6 + $0x3b0] sm:$0xff] }
  0x47   : > { %v350_v21 = vld [vmem:[#allocation6 + $0x340] sm:$0xff]  ;;  %v351_v23 = vld [vmem:[#allocation6 + $0x348] sm:$0xff]  ;;  %385 = vmatpush.msra.mxu0 %v286_v20  ;;  %425 = vmatpush.msra.mxu2 %v287_v22  ;;  %v301_v10 = vld [vmem:[#allocation6 + $0x1b8] sm:$0xff] }
  0x48   : > { %v282_v24 = vld [vmem:[#allocation6 + $0x120] sm:$0xff]  ;;  %405 = vmatpush.msra.mxu1 %v350_v21  ;;  %v283_v26 = vld [vmem:[#allocation6 + $0x128] sm:$0xff]  ;;  %445 = vmatpush.msra.mxu3 %v351_v23  ;;  %v365_v11 = vld [vmem:[#allocation6 + $0x3b8] sm:$0xff] }
  0x49   : > { %v346_v25 = vld [vmem:[#allocation6 + $0x320] sm:$0xff]  ;;  %v347_v27 = vld [vmem:[#allocation6 + $0x328] sm:$0xff]  ;;  %386 = vmatpush.msra.mxu0 %v282_v24  ;;  %426 = vmatpush.msra.mxu2 %v283_v26  ;;  %v296_v12 = vld [vmem:[#allocation6 + $0x190] sm:$0xff] }
  0x4a   : > { %v278_v28 = vld [vmem:[#allocation6 + $0x100] sm:$0xff]  ;;  %406 = vmatpush.msra.mxu1 %v346_v25  ;;  %v279_v30 = vld [vmem:[#allocation6 + $0x108] sm:$0xff]  ;;  %446 = vmatpush.msra.mxu3 %v347_v27  ;;  %v360_v13 = vld [vmem:[#allocation6 + $0x390] sm:$0xff] }
  0x4b   : > { %v342_v29 = vld [vmem:[#allocation6 + $0x300] sm:$0xff]  ;;  %v343_v31 = vld [vmem:[#allocation6 + $0x308] sm:$0xff]  ;;  %387 = vmatpush.msra.mxu0 %v278_v28  ;;  %427 = vmatpush.msra.mxu2 %v279_v30  ;;  %v297_v14 = vld [vmem:[#allocation6 + $0x198] sm:$0xff] }
  0x4c   : > { %v274_v32 = vld [vmem:[#allocation6 + $0xe0] sm:$0xff]  ;;  %407 = vmatpush.msra.mxu1 %v342_v29  ;;  %v275_v34 = vld [vmem:[#allocation6 + $0xe8] sm:$0xff]  ;;  %447 = vmatpush.msra.mxu3 %v343_v31  ;;  %v361_v15 = vld [vmem:[#allocation6 + $0x398] sm:$0xff] }
  0x4d   : > { %v338_v33 = vld [vmem:[#allocation6 + $0x2e0] sm:$0xff]  ;;  %v339_v35 = vld [vmem:[#allocation6 + $0x2e8] sm:$0xff]  ;;  %388 = vmatpush.msra.mxu0 %v274_v32  ;;  %428 = vmatpush.msra.mxu2 %v275_v34  ;;  %v244_v17 = vld [vmem:[%s208_s20] sm:$0xff] }
  0x4e   : > { %v270_v36 = vld [vmem:[#allocation6 + $0xc0] sm:$0xff]  ;;  %408 = vmatpush.msra.mxu1 %v338_v33  ;;  %v271_v38 = vld [vmem:[#allocation6 + $0xc8] sm:$0xff]  ;;  %448 = vmatpush.msra.mxu3 %v339_v35  ;;  %v292_v18 = vld [vmem:[#allocation6 + $0x170] sm:$0xff] }
  0x4f   : > { %v334_v37 = vld [vmem:[#allocation6 + $0x2c0] sm:$0xff]  ;;  %v335_v39 = vld [vmem:[#allocation6 + $0x2c8] sm:$0xff]  ;;  %389 = vmatpush.msra.mxu0 %v270_v36  ;;  %429 = vmatpush.msra.mxu2 %v271_v38  ;;  %v356_v19 = vld [vmem:[#allocation6 + $0x370] sm:$0xff] }
  0x50   : > { %v266_v40 = vld [vmem:[#allocation6 + $0xa0] sm:$0xff]  ;;  %409 = vmatpush.msra.mxu1 %v334_v37  ;;  %v267_v42 = vld [vmem:[#allocation6 + $0xa8] sm:$0xff]  ;;  %449 = vmatpush.msra.mxu3 %v335_v39  ;;  %v293_v21 = vld [vmem:[#allocation6 + $0x178] sm:$0xff] }
  0x51   : > { %v330_v41 = vld [vmem:[#allocation6 + $0x2a0] sm:$0xff]  ;;  %v331_v43 = vld [vmem:[#allocation6 + $0x2a8] sm:$0xff]  ;;  %390 = vmatpush.msra.mxu0 %v266_v40  ;;  %430 = vmatpush.msra.mxu2 %v267_v42  ;;  %v357_v22 = vld [vmem:[#allocation6 + $0x378] sm:$0xff] }
  0x52   : > { %v262_v44 = vld [vmem:[#allocation6 + $0x80] sm:$0xff]  ;;  %410 = vmatpush.msra.mxu1 %v330_v41  ;;  %v263_v46 = vld [vmem:[#allocation6 + $0x88] sm:$0xff]  ;;  %450 = vmatpush.msra.mxu3 %v331_v43  ;;  %v288_v23 = vld [vmem:[#allocation6 + $0x150] sm:$0xff] }
  0x53   : > { %v326_v45 = vld [vmem:[#allocation6 + $0x280] sm:$0xff]  ;;  %v327_v47 = vld [vmem:[#allocation6 + $0x288] sm:$0xff]  ;;  %391 = vmatpush.msra.mxu0 %v262_v44  ;;  %431 = vmatpush.msra.mxu2 %v263_v46  ;;  %v352_v24 = vld [vmem:[#allocation6 + $0x350] sm:$0xff] }
  0x54   : > { %v258_v48 = vld [vmem:[#allocation6 + $0x60] sm:$0xff]  ;;  %411 = vmatpush.msra.mxu1 %v326_v45  ;;  %v259_v50 = vld [vmem:[#allocation6 + $0x68] sm:$0xff]  ;;  %451 = vmatpush.msra.mxu3 %v327_v47  ;;  %v289_v25 = vld [vmem:[#allocation6 + $0x158] sm:$0xff] }
  0x55   : > { %v322_v49 = vld [vmem:[#allocation6 + $0x260] sm:$0xff]  ;;  %v323_v51 = vld [vmem:[#allocation6 + $0x268] sm:$0xff]  ;;  %392 = vmatpush.msra.mxu0 %v258_v48  ;;  %432 = vmatpush.msra.mxu2 %v259_v50  ;;  %v353_v26 = vld [vmem:[#allocation6 + $0x358] sm:$0xff] }
  0x56   : > { %v254_v52 = vld [vmem:[#allocation6 + $0x40] sm:$0xff]  ;;  %412 = vmatpush.msra.mxu1 %v322_v49  ;;  %v255_v54 = vld [vmem:[#allocation6 + $0x48] sm:$0xff]  ;;  %452 = vmatpush.msra.mxu3 %v323_v51  ;;  %v284_v27 = vld [vmem:[#allocation6 + $0x130] sm:$0xff] }
  0x57   : > { %v318_v53 = vld [vmem:[#allocation6 + $0x240] sm:$0xff]  ;;  %v319_v55 = vld [vmem:[#allocation6 + $0x248] sm:$0xff]  ;;  %393 = vmatpush.msra.mxu0 %v254_v52  ;;  %433 = vmatpush.msra.mxu2 %v255_v54  ;;  %v348_v28 = vld [vmem:[#allocation6 + $0x330] sm:$0xff] }
  0x58   : > { %v250_v56 = vld [vmem:[#allocation6 + $0x20] sm:$0xff]  ;;  %413 = vmatpush.msra.mxu1 %v318_v53  ;;  %v251_v58 = vld [vmem:[#allocation6 + $0x28] sm:$0xff]  ;;  %453 = vmatpush.msra.mxu3 %v319_v55  ;;  %v285_v29 = vld [vmem:[#allocation6 + $0x138] sm:$0xff] }
  0x59   : > { %v314_v57 = vld [vmem:[#allocation6 + $0x220] sm:$0xff]  ;;  %v315_v59 = vld [vmem:[#allocation6 + $0x228] sm:$0xff]  ;;  %394 = vmatpush.msra.mxu0 %v250_v56  ;;  %434 = vmatpush.msra.mxu2 %v251_v58  ;;  %v349_v30 = vld [vmem:[#allocation6 + $0x338] sm:$0xff] }
  0x5a   : > { %v246_v60 = vld [vmem:[#allocation6] sm:$0xff]  ;;  %414 = vmatpush.msra.mxu1 %v314_v57  ;;  %v247_v62 = vld [vmem:[#allocation6 + $0x8] sm:$0xff]  ;;  %454 = vmatpush.msra.mxu3 %v315_v59  ;;  %v280_v31 = vld [vmem:[#allocation6 + $0x110] sm:$0xff] }
  0x5b   : > { %v310_v61 = vld [vmem:[#allocation6 + $0x200] sm:$0xff]  ;;  %v311_v63 = vld [vmem:[#allocation6 + $0x208] sm:$0xff]  ;;  %395 = vmatpush.msra.mxu0 %v246_v60  ;;  %435 = vmatpush.msra.mxu2 %v247_v62  ;;  %v344_v32 = vld [vmem:[#allocation6 + $0x310] sm:$0xff] }
  0x5c   : > { %415 = vmatpush.msra.mxu1 %v310_v61  ;;  %455 = vmatpush.msra.mxu3 %v311_v63  ;;  %v243_v16 = vld [vmem:[%s198_s21] sm:$0xff]  ;;  %v281_v33 = vld [vmem:[#allocation6 + $0x118] sm:$0xff]  ;;  %v276_v35 = vld [vmem:[#allocation6 + $0xf0] sm:$0xff] }
  0x5d   : > { %460 = vmatpush.msrb.mxu0 %v308_v0  ;;  %500 = vmatpush.msrb.mxu2 %v309_v2  ;;  %v245_v20 = vsub.f32 %v243_v16, %v244_v17  ;;  %v345_v34 = vld [vmem:[#allocation6 + $0x318] sm:$0xff]  ;;  %v340_v36 = vld [vmem:[#allocation6 + $0x2f0] sm:$0xff] }
  0x5e   : > { %480 = vmatpush.msrb.mxu1 %v372_v1  ;;  %520 = vmatpush.msrb.mxu3 %v373_v3  ;;  %v277_v37 = vld [vmem:[#allocation6 + $0xf8] sm:$0xff]  ;;  %v272_v39 = vld [vmem:[#allocation6 + $0xd0] sm:$0xff] }
  0x5f   : > { %461 = vmatpush.msrb.mxu0 %v304_v4  ;;  %501 = vmatpush.msrb.mxu2 %v305_v6  ;;  %375 = vst [vmem:[#allocation1] ss:$2 sm:$0xff] %v245_v20  ;;  %v341_v38 = vld [vmem:[#allocation6 + $0x2f8] sm:$0xff]  ;;  %v336_v40 = vld [vmem:[#allocation6 + $0x2d0] sm:$0xff] }
  0x60   : > { %481 = vmatpush.msrb.mxu1 %v368_v5  ;;  %521 = vmatpush.msrb.mxu3 %v369_v7  ;;  %v273_v41 = vld [vmem:[#allocation6 + $0xd8] sm:$0xff]  ;;  %v268_v43 = vld [vmem:[#allocation6 + $0xb0] sm:$0xff] }
  0x61   : > { %462 = vmatpush.msrb.mxu0 %v300_v8  ;;  %502 = vmatpush.msrb.mxu2 %v301_v10  ;;  %v337_v42 = vld [vmem:[#allocation6 + $0x2d8] sm:$0xff]  ;;  %v332_v44 = vld [vmem:[#allocation6 + $0x2b0] sm:$0xff] }
  0x62   : > { %482 = vmatpush.msrb.mxu1 %v364_v9  ;;  %522 = vmatpush.msrb.mxu3 %v365_v11  ;;  %v269_v45 = vld [vmem:[#allocation6 + $0xb8] sm:$0xff]  ;;  %v264_v47 = vld [vmem:[#allocation6 + $0x90] sm:$0xff] }
  0x63   : > { %463 = vmatpush.msrb.mxu0 %v296_v12  ;;  %503 = vmatpush.msrb.mxu2 %v297_v14  ;;  %v333_v46 = vld [vmem:[#allocation6 + $0x2b8] sm:$0xff]  ;;  %v328_v48 = vld [vmem:[#allocation6 + $0x290] sm:$0xff] }
  0x64   : > { %483 = vmatpush.msrb.mxu1 %v360_v13  ;;  %523 = vmatpush.msrb.mxu3 %v361_v15  ;;  %v265_v49 = vld [vmem:[#allocation6 + $0x98] sm:$0xff]  ;;  %v260_v53 = vld [vmem:[#allocation6 + $0x70] sm:$0xff] }
  0x65   : > { %464 = vmatpush.msrb.mxu0 %v292_v18  ;;  %504 = vmatpush.msrb.mxu2 %v293_v21  ;;  %v329_v50 = vld [vmem:[#allocation6 + $0x298] sm:$0xff]  ;;  %v324_v54 = vld [vmem:[#allocation6 + $0x270] sm:$0xff] }
  0x66   : > { %484 = vmatpush.msrb.mxu1 %v356_v19  ;;  %524 = vmatpush.msrb.mxu3 %v357_v22  ;;  %v376_v51 = vld.sshfl [vmem:[#allocation1] sm:$0xff pattern:$0x75316420]  ;;  %v377_v52 = vld.sshfl [vmem:[#allocation1 + $0x8] sm:$0xff pattern:$0x75316420] }
  0x67   : > { %465 = vmatpush.msrb.mxu0 %v288_v23  ;;  %505 = vmatpush.msrb.mxu2 %v289_v25  ;;  %v261_v55 = vld [vmem:[#allocation6 + $0x78] sm:$0xff]  ;;  %v256_v57 = vld [vmem:[#allocation6 + $0x50] sm:$0xff] }
  0x68   : > { %485 = vmatpush.msrb.mxu1 %v352_v24  ;;  %525 = vmatpush.msrb.mxu3 %v353_v26  ;;  %v325_v56 = vld [vmem:[#allocation6 + $0x278] sm:$0xff]  ;;  %v320_v58 = vld [vmem:[#allocation6 + $0x250] sm:$0xff] }
  0x69   : > { %466 = vmatpush.msrb.mxu0 %v284_v27  ;;  %506 = vmatpush.msrb.mxu2 %v285_v29  ;;  %v257_v59 = vld [vmem:[#allocation6 + $0x58] sm:$0xff]  ;;  %v252_v61 = vld [vmem:[#allocation6 + $0x30] sm:$0xff] }
  0x6a   : > { %486 = vmatpush.msrb.mxu1 %v348_v28  ;;  %526 = vmatpush.msrb.mxu3 %v349_v30  ;;  %v321_v60 = vld [vmem:[#allocation6 + $0x258] sm:$0xff]  ;;  %v316_v62 = vld [vmem:[#allocation6 + $0x230] sm:$0xff] }
  0x6b   : > { %467 = vmatpush.msrb.mxu0 %v280_v31  ;;  %507 = vmatpush.msrb.mxu2 %v281_v33  ;;  %v253_v63 = vld [vmem:[#allocation6 + $0x38] sm:$0xff]  ;;  %v248_v1 = vld [vmem:[#allocation6 + $0x10] sm:$0xff] }
  0x6c   : > { %487 = vmatpush.msrb.mxu1 %v344_v32  ;;  %527 = vmatpush.msrb.mxu3 %v345_v34  ;;  %v317_v0 = vld [vmem:[#allocation6 + $0x238] sm:$0xff]  ;;  %v312_v2 = vld [vmem:[#allocation6 + $0x210] sm:$0xff] }
  0x6d   : > { %468 = vmatpush.msrb.mxu0 %v276_v35  ;;  %508 = vmatpush.msrb.mxu2 %v277_v37  ;;  %v249_v3 = vld [vmem:[#allocation6 + $0x18] sm:$0xff] }
  0x6e   : > { %488 = vmatpush.msrb.mxu1 %v340_v36  ;;  %528 = vmatpush.msrb.mxu3 %v341_v38  ;;  %v313_v4 = vld [vmem:[#allocation6 + $0x218] sm:$0xff] }
  0x6f   : > { %469 = vmatpush.msrb.mxu0 %v272_v39  ;;  %509 = vmatpush.msrb.mxu2 %v273_v41 }
  0x70   : > { %489 = vmatpush.msrb.mxu1 %v336_v40  ;;  %529 = vmatpush.msrb.mxu3 %v337_v42 }
  0x71   : > { %470 = vmatpush.msrb.mxu0 %v268_v43  ;;  %510 = vmatpush.msrb.mxu2 %v269_v45 }
  0x72   : > { %490 = vmatpush.msrb.mxu1 %v332_v44  ;;  %530 = vmatpush.msrb.mxu3 %v333_v46 }
  0x73   : > { %471 = vmatpush.msrb.mxu0 %v264_v47  ;;  %511 = vmatpush.msrb.mxu2 %v265_v49 }
  0x74   : > { %491 = vmatpush.msrb.mxu1 %v328_v48  ;;  %531 = vmatpush.msrb.mxu3 %v329_v50 }
  0x75   : > { %396 = vmatmul.f32.vlgmr.msra.gmra.mxu0 %v376_v51  ;;  %416 = vmatmul.f32.vlgmr.msra.gmra.mxu1 %v377_v52 }
  0x76   : > { %436 = vmatmul.f32.vlgmr.msra.gmra.mxu2 %v376_v51  ;;  %456 = vmatmul.f32.vlgmr.msra.gmra.mxu3 %v377_v52 }
  0x77   : > { %472 = vmatpush.msrb.mxu0 %v260_v53  ;;  %492 = vmatpush.msrb.mxu1 %v324_v54 }
  0x78   : > { %512 = vmatpush.msrb.mxu2 %v261_v55  ;;  %532 = vmatpush.msrb.mxu3 %v325_v56 }
  0x79   : > { %473 = vmatpush.msrb.mxu0 %v256_v57  ;;  %493 = vmatpush.msrb.mxu1 %v320_v58 }
  0x7a   : > { %513 = vmatpush.msrb.mxu2 %v257_v59  ;;  %533 = vmatpush.msrb.mxu3 %v321_v60 }
  0x7b   : > { %474 = vmatpush.msrb.mxu0 %v252_v61  ;;  %494 = vmatpush.msrb.mxu1 %v316_v62 }
  0x7c   : > { %514 = vmatpush.msrb.mxu2 %v253_v63  ;;  %534 = vmatpush.msrb.mxu3 %v317_v0 }
  0x7d   : > { %475 = vmatpush.msrb.mxu0 %v248_v1  ;;  %495 = vmatpush.msrb.mxu1 %v312_v2 }
  0x7e   : > { %515 = vmatpush.msrb.mxu2 %v249_v3  ;;  %535 = vmatpush.msrb.mxu3 %v313_v4 }
  0x7f   : > { %476 = vmatmul.f32.vlgmr.msrb.gmra.mxu0 %v376_v51  ;;  %496 = vmatmul.f32.vlgmr.msrb.gmra.mxu1 %v377_v52 }
  0x80   : > { %516 = vmatmul.f32.vlgmr.msrb.gmra.mxu2 %v376_v51  ;;  %536 = vmatmul.f32.vlgmr.msrb.gmra.mxu3 %v377_v52 }
  0xf2   : > { %v397_v5 = vpop.f32.mrf.mxu0  ;;  %v417_v6 = vpop.f32.mrf.mxu1 }
  0xf3   : > { %v418_v9 = vadd.f32 %v417_v6, %v397_v5 }
  0xf5   : > { %v540_v13 = vmul.f32 %v418_v9, %v418_v9 }
  0xf9   : > { %v437_v7 = vpop.f32.mrf.mxu2  ;;  %v457_v8 = vpop.f32.mrf.mxu3 }
  0xfa   : > { %v458_v16 = vadd.f32 %v457_v8, %v437_v7 }
  0xfc   : > { %v477_v10 = vpop.f32.mrf.mxu0  ;;  %v497_v11 = vpop.f32.mrf.mxu1  ;;  %v541_v20 = vmul.f32 %v458_v16, %v458_v16 }
  0xfd   : > { %v498_v12 = vadd.f32 %v497_v11, %v477_v10 }
  0xff   : > { %v542_v14 = vmul.f32 %v498_v12, %v498_v12 }
 0x101   : > { %v544_v15 = vadd.f32 %v542_v14, %v540_v13 }
 0x103   : > { %v517_v17 = vpop.f32.mrf.mxu2  ;;  %v537_v18 = vpop.f32.mrf.mxu3  ;;  %754 = vrsqrt.f32 %v544_v15  ;;  %vm553_vm0 = vcmp.eq.f32.partialorder %v544_v15, inf  ;;  %v556_v37 = vand.u32 2147483648, %v544_v15  ;;  %vm555_vm1 = vcmp.eq.f32.partialorder %v544_v15, 0.0 }
 0x104   : > { %v538_v19 = vadd.f32 %v537_v18, %v517_v17 }
 0x106   : > { %v543_v21 = vmul.f32 %v538_v19, %v538_v19 }
 0x108   : > { %v545_v22 = vadd.f32 %v543_v21, %v541_v20 }
 0x109   : > { %v755_v23 = vpop.eup %754 }
 0x10a   : > { %v547_v24 = vmul.f32 %v755_v23, %v544_v15  ;;  %756 = vrsqrt.f32 %v545_v22  ;;  %vm565_vm2 = vcmp.eq.f32.partialorder %v545_v22, inf  ;;  %v568_v40 = vand.u32 2147483648, %v545_v22 }
 0x10b   : > { %vm567_vm4 = vcmp.eq.f32.partialorder %v545_v22, 0.0 }
 0x10c   : > { %v548_v25 = vmul.f32 %v755_v23, %v547_v24 }
 0x10e   : > { %v549_v26 = vmul.f32 0.5, %v548_v25 }
 0x110   : > { %v757_v27 = vpop.eup %756  ;;  %v550_v28 = vsub.f32 1.5, %v549_v26 }
 0x111   : > { %v559_v29 = vmul.f32 %v757_v27, %v545_v22 }
 0x112   : > { %v551_v30 = vmul.f32 %v755_v23, %v550_v28 }
 0x113   : > { %v560_v31 = vmul.f32 %v757_v27, %v559_v29 }
 0x114   : > { %v552_v32 = vmul.f32 %v551_v30, %v544_v15 }
 0x115   : > { %v561_v33 = vmul.f32 0.5, %v560_v31 }
 0x116   : > { %v554_v35 = vsel %vm553_vm0, %v544_v15, %v552_v32 }
 0x117   : > { %v562_v34 = vsub.f32 1.5, %v561_v33  ;;  %v557_v39 = vsel %vm555_vm1, %v556_v37, %v554_v35 }
 0x118   : > { %v571_v43 = vsel %vm570_vm3, %v557_v39, 0.0 }
 0x119   : > { %v563_v36 = vmul.f32 %v757_v27, %v562_v34 }
 0x11b   : > { %v564_v38 = vmul.f32 %v563_v36, %v545_v22 }
 0x11d   : > { %v566_v41 = vsel %vm565_vm2, %v545_v22, %v564_v38 }
 0x11e   : > { %v569_v42 = vsel %vm567_vm4, %v568_v40, %v566_v41 }
 0x11f   : > { %v572_v44 = vsel %vm570_vm3, %v569_v42, 0.0 }
 0x120   : > { %v573_v45 = vadd.f32 %v572_v44, %v571_v43 }
 0x122   : > { %574 = vadd.xlane.f32.xlu0 %v573_v45 }
 0x195   : > { %v575_v46 = vpop.xlane.xlu0 %574 }
 0x196   : > { %v576_v47 = vrot.slane %v575_v46, 4 }
 0x198   : > { %v577_v48 = vadd.f32 %v576_v47, %v575_v46 }
 0x19a   : > { %v578_v49 = vrot.slane %v577_v48, 2 }
 0x19c   : > { %v579_v50 = vadd.f32 %v578_v49, %v577_v48 }
 0x19e   : > { %v580_v51 = vrot.slane %v579_v50, 1 }
 0x1a0   : > { %v581_v52 = vadd.f32 %v580_v51, %v579_v50 }
 0x1a2   : > { %695 = vpush %v581_v52 }
 0x1d3   : > { %s696_s8 = spop %695 }
 0x1d4   : > { %v583_v53 = vstv %s696_s8 }
 0x1d5   : > { %585 = vst.msk [vmem:[%s242_s7] sm:$0x1] %vm584_vm5, %v583_v53 }
 0x1d6 PF: > { %p16_p3 = scmp.ge.s32.totalorder %s951_s25, 4   ;;  %s1060_s12 = smov %s882_s13 }
 0x1d7   : > { %s1061_s13 = smov %s886_s14  ;;  %s1062_s14 = smov %s961_s28 }
 0x1d8   : > { %s1063_s15 = smov %s951_s25  ;;  %18 = sbr.rel (!%p16_p3) target bundleno = 5 (0x5), region = 89 }
 0x1dd   :  { %603 = vsyncpa [#allocation3], 1 }
 0x1de   :  { %605 = vsyncpa [#allocation3 + $0x1], 1 }
 0x1df   :  { %606 = vsyncpa [#allocation5], 1 }
 0x1e0   :  { %608 = vsyncpa [#allocation5 + $0x1], 1 }

</bundles_post_ra>
